<compile_context>
chip_gen: v6e
topology: v6e:2x2x1
jax: 0.10.0
libtpu: 0.0.40
codegen_flags: <defaults>
</compile_context>

<pallas_src>
import jax
import jax.numpy as jnp
from jax.experimental import pallas as pl
from jax.experimental.pallas import tpu as pltpu

LN_EPS = 1e-5  # PyTorch nn.LayerNorm default

_HAS_BUFFERED = hasattr(pl, "Buffered")


def _round_up(v, m):
    return ((v + m - 1) // m) * m


def _default_elementwise_dtype():
    """bf16 elementwise LN/ReLU on bf16-native VPUs (v6e / v7x), f32 otherwise."""
    try:
        kind = jax.devices()[0].device_kind.lower()
    except Exception:
        return jnp.float32
    if any(tag in kind for tag in ("v2", "v3", "v4", "v5")):
        return jnp.float32
    return jnp.bfloat16


def _ln_relu(h, gamma, beta, ew_dtype):
    """Two-pass LayerNorm + ReLU.

    Mean / variance reductions and rsqrt stay in f32; the normalize, affine and
    ReLU run in `ew_dtype` (bf16 halves VALU passes on v6e/v7x for the dominant
    elementwise phase; keep f32 on v5e).
    """
    mu = jnp.mean(h, axis=-1, keepdims=True)
    c = h - mu
    var = jnp.mean(c * c, axis=-1, keepdims=True)
    inv = jax.lax.rsqrt(var + LN_EPS)
    y = c.astype(ew_dtype) * inv.astype(ew_dtype)
    y = y * gamma.astype(ew_dtype) + beta.astype(ew_dtype)
    return jnp.maximum(y, 0.0)


def _forward_math(x, w1, w2, w3, p, ew_dtype):
    """Shared math for the Pallas kernel body and the plain-JAX mirror reference.

    Matmul operands bf16, MXU accumulation f32 (preferred_element_type),
    residual add f32.  `p` rows: b1,g1,be1,b2,g2,be2,b3,g3,be3.
    """
    b1, g1, be1 = p[0:1], p[1:2], p[2:3]
    b2, g2, be2 = p[3:4], p[4:5], p[5:6]
    b3, g3, be3 = p[6:7], p[7:8], p[8:9]

    h1 = jnp.dot(x.astype(jnp.bfloat16), w1,
                 preferred_element_type=jnp.float32) + b1
    x1 = _ln_relu(h1, g1, be1, ew_dtype)

    h2 = jnp.dot(x1.astype(jnp.bfloat16), w2,
                 preferred_element_type=jnp.float32) + b2
    x2 = _ln_relu(h2, g2, be2, ew_dtype)

    h3 = jnp.dot(x2.astype(jnp.bfloat16), w3,
                 preferred_element_type=jnp.float32) + b3
    return _ln_relu(h3 + x1.astype(jnp.float32), g3, be3, ew_dtype)


def mlp_forward(x, params, *, block_b=512, out_dtype=jnp.float32,
                elementwise_dtype=None):
    """Fused MLP forward.

    x may be f32 or bf16 (cast to bf16 for the MXU either way); pass
    out_dtype=jnp.bfloat16 to halve output HBM traffic for large batches.
    """
    B, D_in = x.shape
    H = params["w1"].shape[1]
    if elementwise_dtype is None:
        elementwise_dtype = _default_elementwise_dtype()

    # Batch-tile policy: one full-batch tile for small B; otherwise a multiple-of-8
    # tile capped at `block_b` chosen so there are >= 2 grid steps (v7x dual-TC
    # sharding of the "parallel" axis).  The last block may be ragged; Pallas masks
    # the partial store, so no pad / slice round-trip through HBM is needed.
    if B <= 128:
        bb = B
    else:
        bb = max(128, min(block_b, _round_up(pl.cdiv(B, 2), 8)))
    grid = (pl.cdiv(B, bb),)

    def const_spec(shape):
        idx = lambda i: (0,) * len(shape)
        if _HAS_BUFFERED:
            # Constant index_map across the grid -> single-buffer (halves resident
            # weight footprint; matters most on v7x's 64 MiB VMEM as H grows).
            return pl.BlockSpec(shape, idx, pipeline_mode=pl.Buffered(1))
        return pl.BlockSpec(shape, idx)

    # TODO(synk): for hidden_dim >= ~2048 on v7x (64 MiB VMEM), keep w2/w3 in HBM
    # (memory_space=pl.ANY) and K-stream them with pltpu.emit_pipeline instead of
    # replicating full (H, H) blocks in VMEM.
    in_specs = [
        pl.BlockSpec((bb, D_in), lambda i: (i, 0)),   # x, batch-tiled
        const_spec((D_in, H)),                        # w1 (bf16)
        const_spec((H, H)),                           # w2 (bf16)
        const_spec((H, H)),                           # w3 (bf16)
        const_spec((9, H)),                           # packed biases + LN gamma/beta (f32)
    ]
    out_spec = pl.BlockSpec((bb, H), lambda i: (i, 0))

    def kernel(x_ref, w1_ref, w2_ref, w3_ref, p_ref, o_ref):
        out = _forward_math(x_ref[...], w1_ref[...], w2_ref[...], w3_ref[...],
                            p_ref[...], elementwise_dtype)
        o_ref[...] = out.astype(o_ref.dtype)

    # VMEM limit from the actual block footprint (worst case: everything
    # double-buffered) plus headroom for f32 intermediates.
    x_bytes = 2 * bb * D_in * x.dtype.itemsize
    o_bytes = 2 * bb * H * jnp.dtype(out_dtype).itemsize
    w_bytes = 2 * ((D_in * H + 2 * H * H) * 2 + 16 * H * 4)
    scratch_bytes = 10 * bb * H * 4
    footprint = x_bytes + o_bytes + w_bytes + scratch_bytes
    vmem_limit = int(min(max(2 * footprint, 16 << 20), 100 << 20))

    flops = 2 * B * (D_in * H + 2 * H * H)
    bytes_accessed = (B * D_in * x.dtype.itemsize
                      + (D_in * H + 2 * H * H) * 2
                      + 9 * H * 4
                      + B * H * jnp.dtype(out_dtype).itemsize)

    return pl.pallas_call(
        kernel,
        out_shape=jax.ShapeDtypeStruct((B, H), out_dtype),
        grid_spec=pltpu.PrefetchScalarGridSpec(
            num_scalar_prefetch=0,
            grid=grid,
            in_specs=in_specs,
            out_specs=out_spec,
        ),
        compiler_params=pltpu.CompilerParams(
            dimension_semantics=("parallel",),
            vmem_limit_bytes=vmem_limit,
        ),
        cost_estimate=pl.CostEstimate(
            flops=flops, transcendentals=3 * B, bytes_accessed=bytes_accessed),
    )(x, params["w1"], params["w2"], params["w3"], params["p"])


def init_params(key, input_dim, hidden_dim):
    """Mirror nn.Linear (uniform +-1/sqrt(fan_in)) and nn.LayerNorm defaults.

    Kernel weights are stored in bf16 (MXU operands); biases / LN params stay f32
    and are packed row-wise into one (9, H) array: b1,g1,be1,b2,g2,be2,b3,g3,be3.
    f32 master weights are kept only for the full-f32 validation reference.
    """
    ks = jax.random.split(key, 6)

    def linear(kw, kb, fan_in, fan_out):
        bound = float(fan_in) ** -0.5
        w = jax.random.uniform(kw, (fan_in, fan_out), jnp.float32, -bound, bound)
        b = jax.random.uniform(kb, (fan_out,), jnp.float32, -bound, bound)
        return w, b

    w1, b1 = linear(ks[0], ks[1], input_dim, hidden_dim)
    w2, b2 = linear(ks[2], ks[3], hidden_dim, hidden_dim)
    w3, b3 = linear(ks[4], ks[5], hidden_dim, hidden_dim)
    ones = jnp.ones((hidden_dim,), jnp.float32)
    zeros = jnp.zeros((hidden_dim,), jnp.float32)
    packed = jnp.stack([b1, ones, zeros, b2, ones, zeros, b3, ones, zeros], axis=0)

    return {
        "w1": w1.astype(jnp.bfloat16),
        "w2": w2.astype(jnp.bfloat16),
        "w3": w3.astype(jnp.bfloat16),
        "p": packed,
        "w1_f32": w1, "w2_f32": w2, "w3_f32": w3,
    }


def mlp_reference_mirror(x, params, elementwise_dtype):
    """Plain-JAX reference with the kernel's exact numerics (bf16 matmul operands,
    f32 accumulation, f32 LN reductions, `elementwise_dtype` affine/ReLU)."""
    out = _forward_math(x, params["w1"], params["w2"], params["w3"],
                        params["p"], elementwise_dtype)
    return out.astype(jnp.float32)


def mlp_reference_f32(x, params):
    """Full-f32 reference matching the original (f32) PyTorch module; used as a
    sanity check on the intentional bf16-weight numerics change."""
    p = params["p"]

    def ln(h, g, b):
        mu = jnp.mean(h, axis=-1, keepdims=True)
        var = jnp.mean((h - mu) ** 2, axis=-1, keepdims=True)
        return (h - mu) * jax.lax.rsqrt(var + LN_EPS) * g + b

    def lin(a, w, b):
        return jnp.dot(a, w, precision=jax.lax.Precision.HIGHEST) + b

    x1 = jax.nn.relu(ln(lin(x, params["w1_f32"], p[0:1]), p[1:2], p[2:3]))
    x2 = jax.nn.relu(ln(lin(x1, params["w2_f32"], p[3:4]), p[4:5], p[5:6]))
    x3 = lin(x2, params["w3_f32"], p[6:7])
    return jax.nn.relu(ln(x3 + x1, p[7:8], p[8:9]))


if __name__ == "__main__":
    key = jax.random.PRNGKey(0)
    kx1, kx2, kp = jax.random.split(key, 3)

    input_dim = 16     # synthetic stand-in for the numeric CSV feature count
    hidden_dim = 128   # cfg['model']['hidden_dim']
    params = init_params(kp, input_dim, hidden_dim)

    ew = _default_elementwise_dtype()
    tol = 5e-3 if ew == jnp.float32 else 2e-2

    # Case 1: small batch -> single tile.
    x_small = jax.random.normal(kx1, (8, input_dim), jnp.float32)
    out_small = jax.block_until_ready(mlp_forward(x_small, params))
    assert out_small.shape == (8, hidden_dim)
    ref_small = mlp_reference_mirror(x_small, params, ew)
    assert jnp.allclose(out_small, ref_small, atol=tol, rtol=tol), \
        "mismatch vs numerics-mirroring JAX reference (single tile)"
    assert jnp.allclose(out_small, mlp_reference_f32(x_small, params),
                        atol=1e-1, rtol=1e-1), \
        "mismatch vs f32 PyTorch-equivalent reference (single tile)"

    # Case 2: multi-tile batch with a ragged last block (masked-store path).
    x_big = jax.random.normal(kx2, (300, input_dim), jnp.float32)
    out_big = jax.block_until_ready(mlp_forward(x_big, params))
    assert out_big.shape == (300, hidden_dim)
    ref_big = mlp_reference_mirror(x_big, params, ew)
    assert jnp.allclose(out_big, ref_big, atol=tol, rtol=tol), \
        "mismatch vs numerics-mirroring JAX reference (multi-tile, ragged)"
    assert jnp.allclose(out_big, mlp_reference_f32(x_big, params),
                        atol=1e-1, rtol=1e-1), \
        "mismatch vs f32 PyTorch-equivalent reference (multi-tile, ragged)"

    print("KERNEL_OK")
</pallas_src>

<mosaic_0001>
module attributes {stable_mosaic.version = 11 : i64} {
  func.func @kernel(%arg0: i32, %arg1: memref<8x16xf32, #tpu.memory_space<vmem>>, %arg2: memref<16x128xbf16, #tpu.memory_space<vmem>>, %arg3: memref<128x128xbf16, #tpu.memory_space<vmem>>, %arg4: memref<128x128xbf16, #tpu.memory_space<vmem>>, %arg5: memref<9x128xf32, #tpu.memory_space<vmem>>, %arg6: memref<8x128xf32, #tpu.memory_space<vmem>>) attributes {dimension_semantics = [#tpu.dimension_semantics<parallel>], iteration_bounds = array<i64: 1>, scalar_prefetch = 0 : i64, scratch_operands = 0 : i64, tpu.core_type = #tpu.core_type<tc>, window_params = [{transform_indices = @transform_0, window_bounds = array<i64: 8, 16>}, {pipeline_mode = #tpu.pipeline_mode<synchronous>, transform_indices = @transform_1, window_bounds = array<i64: 16, 128>}, {pipeline_mode = #tpu.pipeline_mode<synchronous>, transform_indices = @transform_2, window_bounds = array<i64: 128, 128>}, {pipeline_mode = #tpu.pipeline_mode<synchronous>, transform_indices = @transform_3, window_bounds = array<i64: 128, 128>}, {pipeline_mode = #tpu.pipeline_mode<synchronous>, transform_indices = @transform_4, window_bounds = array<i64: 9, 128>}, {transform_indices = @transform_5, window_bounds = array<i64: 8, 128>}]} {
    %c0 = arith.constant 0 : index
    %c0_0 = arith.constant 0 : index
    %0 = vector.load %arg1[%c0, %c0_0] : memref<8x16xf32, #tpu.memory_space<vmem>>, vector<8x16xf32>
    %c0_1 = arith.constant 0 : index
    %c0_2 = arith.constant 0 : index
    %1 = vector.load %arg2[%c0_1, %c0_2] : memref<16x128xbf16, #tpu.memory_space<vmem>>, vector<16x128xbf16>
    %c0_3 = arith.constant 0 : index
    %c0_4 = arith.constant 0 : index
    %2 = vector.load %arg3[%c0_3, %c0_4] : memref<128x128xbf16, #tpu.memory_space<vmem>>, vector<128x128xbf16>
    %c0_5 = arith.constant 0 : index
    %c0_6 = arith.constant 0 : index
    %3 = vector.load %arg4[%c0_5, %c0_6] : memref<128x128xbf16, #tpu.memory_space<vmem>>, vector<128x128xbf16>
    %c0_7 = arith.constant 0 : index
    %c0_8 = arith.constant 0 : index
    %4 = vector.load %arg5[%c0_7, %c0_8] : memref<9x128xf32, #tpu.memory_space<vmem>>, vector<9x128xf32>
    %5 = vector.extract_strided_slice %4 {offsets = [0, 0], sizes = [1, 128], strides = [1, 1]} : vector<9x128xf32> to vector<1x128xf32>
    %6 = vector.extract_strided_slice %4 {offsets = [1, 0], sizes = [1, 128], strides = [1, 1]} : vector<9x128xf32> to vector<1x128xf32>
    %7 = vector.extract_strided_slice %4 {offsets = [2, 0], sizes = [1, 128], strides = [1, 1]} : vector<9x128xf32> to vector<1x128xf32>
    %8 = vector.extract_strided_slice %4 {offsets = [3, 0], sizes = [1, 128], strides = [1, 1]} : vector<9x128xf32> to vector<1x128xf32>
    %9 = vector.extract_strided_slice %4 {offsets = [4, 0], sizes = [1, 128], strides = [1, 1]} : vector<9x128xf32> to vector<1x128xf32>
    %10 = vector.extract_strided_slice %4 {offsets = [5, 0], sizes = [1, 128], strides = [1, 1]} : vector<9x128xf32> to vector<1x128xf32>
    %11 = vector.extract_strided_slice %4 {offsets = [6, 0], sizes = [1, 128], strides = [1, 1]} : vector<9x128xf32> to vector<1x128xf32>
    %12 = vector.extract_strided_slice %4 {offsets = [7, 0], sizes = [1, 128], strides = [1, 1]} : vector<9x128xf32> to vector<1x128xf32>
    %13 = vector.extract_strided_slice %4 {offsets = [8, 0], sizes = [1, 128], strides = [1, 1]} : vector<9x128xf32> to vector<1x128xf32>
    %14 = arith.truncf %0 : vector<8x16xf32> to vector<8x16xbf16>
    %cst = arith.constant dense<0.000000e+00> : vector<8x128xf32>
    %15 = tpu.matmul %14, %1, %cst {dimension_numbers = #tpu.dot_dimension_numbers<[1], [0], [0], [1], [0, 0, 1, 1], [], []>} : vector<8x16xbf16>, vector<16x128xbf16>, vector<8x128xf32> -> vector<8x128xf32>
    %16 = vector.broadcast %5 : vector<1x128xf32> to vector<8x128xf32>
    %17 = arith.addf %15, %16 : vector<8x128xf32>
    %cst_9 = arith.constant dense<0.000000e+00> : vector<8xf32>
    %18 = vector.multi_reduction <add>, %17, %cst_9 [1] : vector<8x128xf32> to vector<8xf32>
    %19 = vector.shape_cast %18 : vector<8xf32> to vector<8x1xf32>
    %cst_10 = arith.constant 1.280000e+02 : f32
    %20 = vector.broadcast %cst_10 : f32 to vector<8x1xf32>
    %21 = arith.divf %19, %20 : vector<8x1xf32>
    %22 = vector.broadcast %21 : vector<8x1xf32> to vector<8x128xf32>
    %23 = arith.subf %17, %22 : vector<8x128xf32>
    %24 = arith.mulf %23, %23 : vector<8x128xf32>
    %cst_11 = arith.constant dense<0.000000e+00> : vector<8xf32>
    %25 = vector.multi_reduction <add>, %24, %cst_11 [1] : vector<8x128xf32> to vector<8xf32>
    %26 = vector.shape_cast %25 : vector<8xf32> to vector<8x1xf32>
    %cst_12 = arith.constant 1.280000e+02 : f32
    %27 = vector.broadcast %cst_12 : f32 to vector<8x1xf32>
    %28 = arith.divf %26, %27 : vector<8x1xf32>
    %cst_13 = arith.constant 9.99999974E-6 : f32
    %29 = vector.broadcast %cst_13 : f32 to vector<8x1xf32>
    %30 = arith.addf %28, %29 : vector<8x1xf32>
    %31 = math.rsqrt %30 : vector<8x1xf32>
    %32 = arith.truncf %23 : vector<8x128xf32> to vector<8x128xbf16>
    %33 = arith.truncf %31 : vector<8x1xf32> to vector<8x1xbf16>
    %34 = vector.broadcast %33 : vector<8x1xbf16> to vector<8x128xbf16>
    %35 = arith.mulf %32, %34 : vector<8x128xbf16>
    %36 = arith.truncf %6 : vector<1x128xf32> to vector<1x128xbf16>
    %37 = vector.broadcast %36 : vector<1x128xbf16> to vector<8x128xbf16>
    %38 = arith.mulf %35, %37 : vector<8x128xbf16>
    %39 = arith.truncf %7 : vector<1x128xf32> to vector<1x128xbf16>
    %40 = vector.broadcast %39 : vector<1x128xbf16> to vector<8x128xbf16>
    %41 = arith.addf %38, %40 : vector<8x128xbf16>
    %cst_14 = arith.constant 0.000000e+00 : bf16
    %42 = vector.broadcast %cst_14 : bf16 to vector<8x128xbf16>
    %43 = arith.maximumf %41, %42 : vector<8x128xbf16>
    %cst_15 = arith.constant dense<0.000000e+00> : vector<8x128xf32>
    %44 = tpu.matmul %43, %2, %cst_15 {dimension_numbers = #tpu.dot_dimension_numbers<[1], [0], [0], [1], [0, 0, 1, 1], [], []>} : vector<8x128xbf16>, vector<128x128xbf16>, vector<8x128xf32> -> vector<8x128xf32>
    %45 = vector.broadcast %8 : vector<1x128xf32> to vector<8x128xf32>
    %46 = arith.addf %44, %45 : vector<8x128xf32>
    %cst_16 = arith.constant dense<0.000000e+00> : vector<8xf32>
    %47 = vector.multi_reduction <add>, %46, %cst_16 [1] : vector<8x128xf32> to vector<8xf32>
    %48 = vector.shape_cast %47 : vector<8xf32> to vector<8x1xf32>
    %cst_17 = arith.constant 1.280000e+02 : f32
    %49 = vector.broadcast %cst_17 : f32 to vector<8x1xf32>
    %50 = arith.divf %48, %49 : vector<8x1xf32>
    %51 = vector.broadcast %50 : vector<8x1xf32> to vector<8x128xf32>
    %52 = arith.subf %46, %51 : vector<8x128xf32>
    %53 = arith.mulf %52, %52 : vector<8x128xf32>
    %cst_18 = arith.constant dense<0.000000e+00> : vector<8xf32>
    %54 = vector.multi_reduction <add>, %53, %cst_18 [1] : vector<8x128xf32> to vector<8xf32>
    %55 = vector.shape_cast %54 : vector<8xf32> to vector<8x1xf32>
    %cst_19 = arith.constant 1.280000e+02 : f32
    %56 = vector.broadcast %cst_19 : f32 to vector<8x1xf32>
    %57 = arith.divf %55, %56 : vector<8x1xf32>
    %cst_20 = arith.constant 9.99999974E-6 : f32
    %58 = vector.broadcast %cst_20 : f32 to vector<8x1xf32>
    %59 = arith.addf %57, %58 : vector<8x1xf32>
    %60 = math.rsqrt %59 : vector<8x1xf32>
    %61 = arith.truncf %52 : vector<8x128xf32> to vector<8x128xbf16>
    %62 = arith.truncf %60 : vector<8x1xf32> to vector<8x1xbf16>
    %63 = vector.broadcast %62 : vector<8x1xbf16> to vector<8x128xbf16>
    %64 = arith.mulf %61, %63 : vector<8x128xbf16>
    %65 = arith.truncf %9 : vector<1x128xf32> to vector<1x128xbf16>
    %66 = vector.broadcast %65 : vector<1x128xbf16> to vector<8x128xbf16>
    %67 = arith.mulf %64, %66 : vector<8x128xbf16>
    %68 = arith.truncf %10 : vector<1x128xf32> to vector<1x128xbf16>
    %69 = vector.broadcast %68 : vector<1x128xbf16> to vector<8x128xbf16>
    %70 = arith.addf %67, %69 : vector<8x128xbf16>
    %cst_21 = arith.constant 0.000000e+00 : bf16
    %71 = vector.broadcast %cst_21 : bf16 to vector<8x128xbf16>
    %72 = arith.maximumf %70, %71 : vector<8x128xbf16>
    %cst_22 = arith.constant dense<0.000000e+00> : vector<8x128xf32>
    %73 = tpu.matmul %72, %3, %cst_22 {dimension_numbers = #tpu.dot_dimension_numbers<[1], [0], [0], [1], [0, 0, 1, 1], [], []>} : vector<8x128xbf16>, vector<128x128xbf16>, vector<8x128xf32> -> vector<8x128xf32>
    %74 = vector.broadcast %11 : vector<1x128xf32> to vector<8x128xf32>
    %75 = arith.addf %73, %74 : vector<8x128xf32>
    %76 = arith.extf %43 : vector<8x128xbf16> to vector<8x128xf32>
    %77 = arith.addf %75, %76 : vector<8x128xf32>
    %cst_23 = arith.constant dense<0.000000e+00> : vector<8xf32>
    %78 = vector.multi_reduction <add>, %77, %cst_23 [1] : vector<8x128xf32> to vector<8xf32>
    %79 = vector.shape_cast %78 : vector<8xf32> to vector<8x1xf32>
    %cst_24 = arith.constant 1.280000e+02 : f32
    %80 = vector.broadcast %cst_24 : f32 to vector<8x1xf32>
    %81 = arith.divf %79, %80 : vector<8x1xf32>
    %82 = vector.broadcast %81 : vector<8x1xf32> to vector<8x128xf32>
    %83 = arith.subf %77, %82 : vector<8x128xf32>
    %84 = arith.mulf %83, %83 : vector<8x128xf32>
    %cst_25 = arith.constant dense<0.000000e+00> : vector<8xf32>
    %85 = vector.multi_reduction <add>, %84, %cst_25 [1] : vector<8x128xf32> to vector<8xf32>
    %86 = vector.shape_cast %85 : vector<8xf32> to vector<8x1xf32>
    %cst_26 = arith.constant 1.280000e+02 : f32
    %87 = vector.broadcast %cst_26 : f32 to vector<8x1xf32>
    %88 = arith.divf %86, %87 : vector<8x1xf32>
    %cst_27 = arith.constant 9.99999974E-6 : f32
    %89 = vector.broadcast %cst_27 : f32 to vector<8x1xf32>
    %90 = arith.addf %88, %89 : vector<8x1xf32>
    %91 = math.rsqrt %90 : vector<8x1xf32>
    %92 = arith.truncf %83 : vector<8x128xf32> to vector<8x128xbf16>
    %93 = arith.truncf %91 : vector<8x1xf32> to vector<8x1xbf16>
    %94 = vector.broadcast %93 : vector<8x1xbf16> to vector<8x128xbf16>
    %95 = arith.mulf %92, %94 : vector<8x128xbf16>
    %96 = arith.truncf %12 : vector<1x128xf32> to vector<1x128xbf16>
    %97 = vector.broadcast %96 : vector<1x128xbf16> to vector<8x128xbf16>
    %98 = arith.mulf %95, %97 : vector<8x128xbf16>
    %99 = arith.truncf %13 : vector<1x128xf32> to vector<1x128xbf16>
    %100 = vector.broadcast %99 : vector<1x128xbf16> to vector<8x128xbf16>
    %101 = arith.addf %98, %100 : vector<8x128xbf16>
    %cst_28 = arith.constant 0.000000e+00 : bf16
    %102 = vector.broadcast %cst_28 : bf16 to vector<8x128xbf16>
    %103 = arith.maximumf %101, %102 : vector<8x128xbf16>
    %104 = arith.extf %103 : vector<8x128xbf16> to vector<8x128xf32>
    %c0_29 = arith.constant 0 : index
    %c0_30 = arith.constant 0 : index
    %105 = vector.load %arg6[%c0_29, %c0_30] : memref<8x128xf32, #tpu.memory_space<vmem>>, vector<8x128xf32>
    tpu.vector_store %arg6[%c0_29, %c0_30], %104 {strides = array<i32>} : memref<8x128xf32, #tpu.memory_space<vmem>>, vector<8x128xf32>,
    return
  }
  func.func @transform_0(%arg0: i32) -> (i32, i32) {
    %c0_i32 = arith.constant 0 : i32
    %c0_i32_0 = arith.constant 0 : i32
    return %arg0, %c0_i32 : i32, i32
  }
  func.func @transform_1(%arg0: i32) -> (i32, i32) {
    %c0_i32 = arith.constant 0 : i32
    %c0_i32_0 = arith.constant 0 : i32
    %c0_i32_1 = arith.constant 0 : i32
    return %c0_i32, %c0_i32_0 : i32, i32
  }
  func.func @transform_2(%arg0: i32) -> (i32, i32) {
    %c0_i32 = arith.constant 0 : i32
    %c0_i32_0 = arith.constant 0 : i32
    %c0_i32_1 = arith.constant 0 : i32
    return %c0_i32, %c0_i32_0 : i32, i32
  }
  func.func @transform_3(%arg0: i32) -> (i32, i32) {
    %c0_i32 = arith.constant 0 : i32
    %c0_i32_0 = arith.constant 0 : i32
    %c0_i32_1 = arith.constant 0 : i32
    return %c0_i32, %c0_i32_0 : i32, i32
  }
  func.func @transform_4(%arg0: i32) -> (i32, i32) {
    %c0_i32 = arith.constant 0 : i32
    %c0_i32_0 = arith.constant 0 : i32
    %c0_i32_1 = arith.constant 0 : i32
    return %c0_i32, %c0_i32_0 : i32, i32
  }
  func.func @transform_5(%arg0: i32) -> (i32, i32) {
    %c0_i32 = arith.constant 0 : i32
    %c0_i32_0 = arith.constant 0 : i32
    return %arg0, %c0_i32 : i32, i32
  }
}

</mosaic_0001>

<bundles_post_ra>
// kernel: tpu_custom_call.1
= control target key start
LH: loop header
LB: loop body
LE: loop exit
PB: predicated region body
PF: predicated region fallthrough
CT: control target
= control target key end

     0   :  { %10 = vsyncpa [#allocation3], 0  ;;  %s838_s0 = inlined_call_operand.hbm [shape: f32[8,16], index: 0, kind: input, shape index: {}]   ;;  %s839_s1 = inlined_call_operand.hbm [shape: bf16[16,128], index: 1, kind: input, shape index: {}]   ;;  %s840_s2 = inlined_call_operand.hbm [shape: bf16[128,128], index: 2, kind: input, shape index: {}]   ;;  %s841_s3 = inlined_call_operand.hbm [shape: bf16[128,128], index: 3, kind: input, shape index: {}]   ;;  %s842_s4 = inlined_call_operand.hbm [shape: f32[9,128], index: 4, kind: input, shape index: {}]   ;;  %s843_s5 = inlined_call_operand.hbm [shape: f32[8,128], index: 5, kind: output, shape index: {}]  }
   0x1   :  { %11 = vsyncpa [#allocation6], 0 }
   0x2   :  { %12 = vsyncpa [#allocation9], 0 }
   0x3   :  { %13 = vsyncpa [#allocation4], 0  ;;  %s717_s18 = smov [#allocation5]  }
   0x4   :  { %s29_s19 = sshll.u32 %s717_s18, 4  ;;  %s30_s19 = int_to_ptr.vmem [resolvable:$true] %s29_s19 }
   0x5   :  { %s597_s20 = scalar_lea.vmem %s30_s19, 128  ;;  %p602_p1 = scmp.lt.s32.totalorder %s30_s19, %s30_s19 }
   0x6   :  { %p598_p0 = scmp.ne.s32.totalorder %s30_s19, %s597_s20  ;;  %p603_p2 = scmp.lt.s32.totalorder %s597_s20, %s597_s20 }
   0x8   :  { %p604_p3 = por %p603_p2, %p602_p1 }
   0xa   :  { %p605_p4 = pnand %p604_p3, %p598_p0 }
   0xc   :  { %608 = shalt.err (!%p605_p4)
}
   0xd   :  { %s718_s21 = smov 64   ;;  %s719_s22 = smov 4  }
   0xe   :  { %35 = dma.hbm_to_vmem [thread:$0]  %s839_s1, 128, %s30_s19, [#allocation6], %s718_s21, %s718_s21, %s719_s22  }
   0xf   :  { %s720_s25 = smov [#allocation8]   ;;  %s721_s27 = smov [#allocation2]  }
  0x10   :  { %s53_s26 = sshll.u32 %s720_s25, 4  ;;  %s20_s28 = sshll.u32 %s721_s27, 4  ;;  %s54_s26 = int_to_ptr.vmem [resolvable:$true] %s53_s26  ;;  %s21_s28 = int_to_ptr.vmem [resolvable:$true] %s20_s28 }
  0x11   :  { %s617_s29 = scalar_lea.vmem %s54_s26, 1024  ;;  %p622_p6 = scmp.lt.s32.totalorder %s54_s26, %s54_s26 }
  0x12   :  { %p618_p5 = scmp.ne.s32.totalorder %s54_s26, %s617_s29  ;;  %p623_p7 = scmp.lt.s32.totalorder %s617_s29, %s617_s29 }
  0x14   :  { %p624_p8 = por %p623_p7, %p622_p6 }
  0x16   :  { %p625_p9 = pnand %p624_p8, %p618_p5 }
  0x18   :  { %628 = shalt.err (!%p625_p9)
}
  0x19   :  { %59 = dma.hbm_to_vmem [thread:$0]  %s841_s3, 1024, %s54_s26, [#allocation9], %s718_s21, %s718_s21, %s719_s22  }
  0x1a   :  { %s637_s1 = scalar_lea.vmem %s21_s28, 128  ;;  %p642_p11 = scmp.lt.s32.totalorder %s21_s28, %s21_s28 }
  0x1b   :  { %p638_p10 = scmp.ne.s32.totalorder %s21_s28, %s637_s1  ;;  %p643_p12 = scmp.lt.s32.totalorder %s637_s1, %s637_s1 }
  0x1d   :  { %p644_p13 = por %p643_p12, %p642_p11 }
  0x1f   :  { %p645_p0 = pnand %p644_p13, %p638_p10 }
  0x21   :  { %648 = shalt.err (!%p645_p0)
}
  0x22   :  { %23 = dma.hbm_to_vmem [thread:$0]  %s838_s0, 128, %s21_s28, [#allocation3]  }
  0x23   :  { %s722_s9 = smov [#allocation7]   ;;  %s723_s11 = smov [#allocation10]  }
  0x24   :  { %s41_s10 = sshll.u32 %s722_s9, 4  ;;  %s65_s12 = sshll.u32 %s723_s11, 4  ;;  %s42_s10 = int_to_ptr.vmem [resolvable:$true] %s41_s10  ;;  %s66_s12 = int_to_ptr.vmem [resolvable:$true] %s65_s12 }
  0x25   :  { %s657_s13 = scalar_lea.vmem %s42_s10, 1024  ;;  %p662_p2 = scmp.lt.s32.totalorder %s42_s10, %s42_s10 }
  0x26   :  { %p658_p1 = scmp.ne.s32.totalorder %s42_s10, %s657_s13  ;;  %p663_p3 = scmp.lt.s32.totalorder %s657_s13, %s657_s13 }
  0x28   :  { %p664_p4 = por %p663_p3, %p662_p2 }
  0x2a   :  { %p665_p5 = pnand %p664_p4, %p658_p1 }
  0x2c   :  { %668 = shalt.err (!%p665_p5)
}
  0x2d   :  { %47 = dma.hbm_to_vmem [thread:$0]  %s840_s2, 1024, %s42_s10, [#allocation6], %s718_s21, %s718_s21, %s719_s22  }
  0x2e   :  { %s677_s0 = scalar_lea.vmem %s66_s12, 256  ;;  %p682_p7 = scmp.lt.s32.totalorder %s66_s12, %s66_s12 }
  0x2f   :  { %p678_p6 = scmp.ne.s32.totalorder %s66_s12, %s677_s0  ;;  %p683_p8 = scmp.lt.s32.totalorder %s677_s0, %s677_s0 }
  0x31   :  { %p684_p9 = por %p683_p8, %p682_p7 }
  0x33   :  { %p685_p10 = pnand %p684_p9, %p678_p6 }
  0x35   :  { %688 = shalt.err (!%p685_p10)
}
  0x36   :  { %s724_s15 = smov 128   ;;  %s725_s16 = smov 8  }
  0x37   :  { %71 = dma.hbm_to_vmem [thread:$0]  %s842_s4, 256, %s66_s12, [#allocation9], %s724_s15, %s724_s15, %s725_s16  }
  0x38   :  { %709 = dma.done.wait [#allocation3], 128  }
  0x39   :  { %710 = vsyncadd [#allocation3], 4294967168 }
  0x3a   :  { %711 = dma.done.wait [#allocation6], 1152  }
  0x3b   :  { %712 = vsyncadd [#allocation6], 4294966144 }
  0x3c   :  { %713 = dma.done.wait [#allocation9], 1280  }
  0x3d   :  { %714 = vsyncadd [#allocation9], 4294966016  ;;  %v726_v0 = vmov 0.0   ;;  %vm727_vm0 = vmmov 0   ;;  %v566_v1 = vld [vmem:[#allocation5] sm:$0xff]   ;;  %v88_v2 = vld [vmem:[#allocation2] sm:$0xff]  ;;  %v126_v4 = vlaneseq }
  0x3e   :  { %507 = vmatprep.subr.bf16.mxu0 %v726_v0  ;;  %509 = vmatprep.mubr.msk.bf16.mxu0 %vm727_vm0, %v726_v0  ;;  %vm136_vm1 = vcmask 130048   ;;  %v125_v3 = vpack.c.bf16 %v88_v2, %v88_v2  ;;  %v795_v7 = vld [vmem:[#allocation10] sm:$0xff]  ;;  %v567_v14 = vld [vmem:[#allocation7 + $0x38] sm:$0xff]   ;;  %v568_v19 = vld [vmem:[#allocation7 + $0x30] sm:$0xff]   ;;  %v728_v42 = vmov 0   ;;  %s729_s2 = smov [#allocation11]  }
  0x3f   :  { %513 = vmatprep.subr.bf16.mxu1 %v726_v0  ;;  %529 = vmatprep.mubr.msk.bf16.mxu1 %vm727_vm0, %v726_v0  ;;  %v790_v5 = vshrl.u32 %v126_v4, 7  ;;  %v569_v20 = vld [vmem:[#allocation7 + $0x28] sm:$0xff]   ;;  %v570_v21 = vld [vmem:[#allocation7 + $0x20] sm:$0xff]   ;;  %v571_v22 = vld [vmem:[#allocation7 + $0x18] sm:$0xff]   ;;  %v194_v29 = vpack.c.bf16 %v795_v7, %v795_v7  ;;  %s458_s4 = sshll.u32 %s729_s2, 4  ;;  %s459_s4 = int_to_ptr.vmem [resolvable:$true] %s458_s4 }
  0x40   :  { %508 = vmatpush3.bf16.msra.mxu0 %v566_v1  ;;  %514 = vmatpush3.bf16.msra.mxu1 %v567_v14  ;;  %v572_v23 = vld [vmem:[#allocation7 + $0x10] sm:$0xff]   ;;  %v573_v24 = vld [vmem:[#allocation7 + $0x8] sm:$0xff]   ;;  %v574_v25 = vld [vmem:[#allocation7] sm:$0xff]   ;;  %s689_s19 = scalar_lea.vmem %s459_s4, 128  ;;  %p694_p12 = scmp.lt.s32.totalorder %s459_s4, %s459_s4 }
  0x41   :  { %533 = vmatprep.subr.bf16.mxu0 %v726_v0  ;;  %v793_v6 = vsub.s32 0, %v790_v5  ;;  %515 = vmatprep.subr.bf16.mxu1 %v726_v0  ;;  %v196_v30 = vshrl.u32 %v194_v29, 16  ;;  %v204_v32 = vpack.i.b16 %v194_v29, %v194_v29  ;;  %v208_v33 = vsub.s32 1, %v790_v5  ;;  %v575_v51 = vld [vmem:[#allocation8 + $0x38] sm:$0xff]   ;;  %v576_v56 = vld [vmem:[#allocation8 + $0x30] sm:$0xff]   ;;  %v577_v57 = vld [vmem:[#allocation8 + $0x28] sm:$0xff]   ;;  %p690_p11 = scmp.ne.s32.totalorder %s459_s4, %s689_s19  ;;  %p695_p13 = scmp.lt.s32.totalorder %s689_s19, %s689_s19 }
  0x42   :  { %v214_v44 = vsub.s32 3, %v790_v5  ;;  %v578_v58 = vld [vmem:[#allocation8 + $0x20] sm:$0xff]   ;;  %v579_v59 = vld [vmem:[#allocation8 + $0x18] sm:$0xff]   ;;  %v580_v60 = vld [vmem:[#allocation8 + $0x10] sm:$0xff]  }
  0x43   :  { %510 = vmatmul.mubr.msk.bf16.vlgmr.msra.gmra.mxu0 %vm136_vm1, %v125_v3  ;;  %v129_v8 = vrot.slane %v795_v7, %v793_v6  ;;  %v808_v31 = vpack.i.b16 %v196_v30, %v196_v30  ;;  %v209_v39 = vrot.slane %v204_v32, %v208_v33  ;;  %v581_v61 = vld [vmem:[#allocation8 + $0x8] sm:$0xff]   ;;  %v582_v62 = vld [vmem:[#allocation8] sm:$0xff]   ;;  %v319_v3 = vsub.s32 2, %v790_v5  ;;  %p696_p0 = por %p695_p13, %p694_p12 }
  0x44   :  { %549 = vmatprep.mubr.msk.bf16.mxu0 %vm727_vm0, %v726_v0  ;;  %516 = vmatpush3.bf16.msra.mxu1 %v568_v19  ;;  %v215_v45 = vrot.slane %v795_v7, %v214_v44 }
  0x45   :  { %517 = vmatprep.subr.bf16.mxu1 %v726_v0  ;;  %v202_v37 = vrot.slane %v808_v31, %v793_v6  ;;  %534 = vmatpush3.bf16.msra.mxu0 %v575_v51  ;;  %p697_p1 = pnand %p696_p0, %p690_p11 }
  0x46   :  { %535 = vmatprep.subr.bf16.mxu0 %v726_v0 }
  0x48   :  { %518 = vmatpush3.bf16.msra.mxu1 %v569_v20 }
  0x49   :  { %519 = vmatprep.subr.bf16.mxu1 %v726_v0  ;;  %536 = vmatpush3.bf16.msra.mxu0 %v576_v56 }
  0x4a   :  { %537 = vmatprep.subr.bf16.mxu0 %v726_v0 }
  0x4c   :  { %520 = vmatpush3.bf16.msra.mxu1 %v570_v21 }
  0x4d   :  { %521 = vmatprep.subr.bf16.mxu1 %v726_v0  ;;  %538 = vmatpush3.bf16.msra.mxu0 %v577_v57 }
  0x4e   :  { %539 = vmatprep.subr.bf16.mxu0 %v726_v0 }
  0x50   :  { %522 = vmatpush3.bf16.msra.mxu1 %v571_v22 }
  0x51   :  { %523 = vmatprep.subr.bf16.mxu1 %v726_v0  ;;  %540 = vmatpush3.bf16.msra.mxu0 %v578_v58 }
  0x52   :  { %541 = vmatprep.subr.bf16.mxu0 %v726_v0 }
  0x54   :  { %524 = vmatpush3.bf16.msra.mxu1 %v572_v23 }
  0x55   :  { %525 = vmatprep.subr.bf16.mxu1 %v726_v0  ;;  %542 = vmatpush3.bf16.msra.mxu0 %v579_v59 }
  0x56   :  { %543 = vmatprep.subr.bf16.mxu0 %v726_v0 }
  0x58   :  { %526 = vmatpush3.bf16.msra.mxu1 %v573_v24 }
  0x59   :  { %527 = vmatprep.subr.bf16.mxu1 %v726_v0  ;;  %544 = vmatpush3.bf16.msra.mxu0 %v580_v60 }
  0x5a   :  { %545 = vmatprep.subr.bf16.mxu0 %v726_v0 }
  0x5c   :  { %528 = vmatpush3.bf16.msra.mxu1 %v574_v25 }
  0x5d   :  { %546 = vmatpush3.bf16.msra.mxu0 %v581_v61 }
  0x5e   :  { %547 = vmatprep.subr.bf16.mxu0 %v726_v0  ;;  %v330_v0 = vsub.s32 6, %v790_v5 }
  0x61   :  { %548 = vmatpush3.bf16.msra.mxu0 %v582_v62 }
 0x103   :  { %v174_v9 = vpop.f32.mrf.mxu0 }
 0x104   :  { %v175_v10 = vadd.f32 %v174_v9, %v129_v8  ;;  %v320_v9 = vrot.slane %v204_v32, %v319_v3  ;;  %v124_v32 = vld [vmem:[#allocation10 + $0x8] sm:$0x1] }
 0x105   :  { %v511_v11 = vpop.f32.mrf.mxu0  ;;  %v440_v33 = vpack.c.bf16 %v124_v32, %v124_v32 }
 0x106   :  { %180 = vadd.xlane.f32.xlu0 %v175_v10 }
 0x107   :  { %v177_v12 = vpop.f32.mrf.mxu0 }
 0x108   :  { %v325_v12 = vrot.slane %v808_v31, %v319_v3 }
 0x109   :  { %v512_v13 = vpop.f32.mrf.mxu0 }
 0x18f   :  { %v181_v15 = vpop.xlane.xlu0 %180 }
 0x190   :  { %v183_v16 = vmul.f32 0.0078125, %v181_v15 }
 0x192   :  { %v184_v17 = vsub.f32 %v175_v10, %v183_v16  ;;  %v331_v16 = vrot.slane %v795_v7, %v330_v0  ;;  %v442_v7 = vpack.i.b16 %v440_v33, %v440_v33 }
 0x194   :  { %v185_v18 = vmul.f32 %v184_v17, %v184_v17  ;;  %v191_v35 = vpack.c.bf16 %v184_v17, %v184_v17 }
 0x196   :  { %186 = vadd.xlane.f32.xlu0 %v185_v18 }
 0x21f   :  { %v187_v26 = vpop.xlane.xlu0 %186 }
 0x220   :  { %v188_v27 = vmul.f32 0.0078125, %v187_v26 }
 0x222   :  { %v189_v28 = vadd.f32 1e-05, %v188_v27 }
 0x224   :  { %583 = vrsqrt.f32 %v189_v28 }
 0x231   :  { %v584_v34 = vpop.eup %583 }
 0x232   :  { %v192_v36 = vpack.c.bf16 %v584_v34, %v584_v34 }
 0x234   :  { %v193_v38 = vmul.bf16 %v192_v36, %v191_v35  ;;  %v438_v35 = vrot.slane %v808_v31, %v214_v44 }
 0x236   :  { %v203_v40 = vmul.bf16 %v202_v37, %v193_v38 }
 0x238   :  { %v210_v41 = vadd.bf16 %v209_v39, %v203_v40  ;;  %v447_v39 = vrot.slane %v442_v7, %v793_v6 }
 0x23a   :  { %v211_v43 = vmax.bf16 %v728_v42, %v210_v41 }
 0x23c   :  { %530 = vmatmul.mubr.bf16.vlgmr.msra.gmra.mxu1 %v211_v43  ;;  %v420_v19 = vunpack.c.l.bf16 %v211_v43 }
 0x2fc   :  { %v298_v46 = vpop.f32.mrf.mxu1 }
 0x2fd   :  { %v299_v47 = vadd.f32 %v298_v46, %v215_v45 }
 0x2fe   :  { %v531_v48 = vpop.f32.mrf.mxu1 }
 0x2ff   :  { %304 = vadd.xlane.f32.xlu1 %v299_v47 }
 0x300   :  { %v301_v49 = vpop.f32.mrf.mxu1 }
 0x302   :  { %v532_v50 = vpop.f32.mrf.mxu1 }
 0x388   :  { %v305_v52 = vpop.xlane.xlu1 %304 }
 0x389   :  { %v306_v53 = vmul.f32 0.0078125, %v305_v52 }
 0x38b   :  { %v307_v54 = vsub.f32 %v299_v47, %v306_v53 }
 0x38d   :  { %v308_v55 = vmul.f32 %v307_v54, %v307_v54  ;;  %v314_v8 = vpack.c.bf16 %v307_v54, %v307_v54 }
 0x38f   :  { %309 = vadd.xlane.f32.xlu1 %v308_v55 }
 0x418   :  { %v310_v63 = vpop.xlane.xlu1 %309 }
 0x419   :  { %v311_v1 = vmul.f32 0.0078125, %v310_v63 }
 0x41b   :  { %v312_v2 = vadd.f32 1e-05, %v311_v1 }
 0x41d   :  { %585 = vrsqrt.f32 %v312_v2 }
 0x42a   :  { %v586_v4 = vpop.eup %585 }
 0x42b   :  { %v315_v10 = vpack.c.bf16 %v586_v4, %v586_v4 }
 0x42d   :  { %v316_v11 = vmul.bf16 %v315_v10, %v314_v8 }
 0x42f   :  { %v321_v13 = vmul.bf16 %v320_v9, %v316_v11 }
 0x431   :  { %v326_v14 = vadd.bf16 %v325_v12, %v321_v13 }
 0x433   :  { %v327_v15 = vmax.bf16 %v728_v42, %v326_v14 }
 0x435   :  { %550 = vmatmul.mubr.bf16.vlgmr.msra.gmra.mxu0 %v327_v15 }
 0x4f5   :  { %v414_v17 = vpop.f32.mrf.mxu0 }
 0x4f6   :  { %v415_v18 = vadd.f32 %v414_v17, %v331_v16 }
 0x4f7   :  { %v551_v20 = vpop.f32.mrf.mxu0 }
 0x4f8   :  { %v421_v21 = vadd.f32 %v420_v19, %v415_v18 }
 0x4f9   :  { %v417_v22 = vpop.f32.mrf.mxu0 }
 0x4fa   :  { %422 = vadd.xlane.f32.xlu0 %v421_v21 }
 0x4fb   :  { %v552_v23 = vpop.f32.mrf.mxu0 }
 0x583   :  { %v423_v24 = vpop.xlane.xlu0 %422 }
 0x584   :  { %v424_v25 = vmul.f32 0.0078125, %v423_v24 }
 0x586   :  { %v425_v26 = vsub.f32 %v421_v21, %v424_v25 }
 0x588   :  { %v426_v27 = vmul.f32 %v425_v26, %v425_v26  ;;  %v432_v36 = vpack.c.bf16 %v425_v26, %v425_v26 }
 0x58a   :  { %427 = vadd.xlane.f32.xlu1 %v426_v27 }
 0x613   :  { %v428_v28 = vpop.xlane.xlu1 %427 }
 0x614   :  { %v429_v29 = vmul.f32 0.0078125, %v428_v28 }
 0x616   :  { %v430_v30 = vadd.f32 1e-05, %v429_v29 }
 0x618   :  { %587 = vrsqrt.f32 %v430_v30 }
 0x625   :  { %v588_v34 = vpop.eup %587 }
 0x626   :  { %v433_v37 = vpack.c.bf16 %v588_v34, %v588_v34 }
 0x628   :  { %v434_v38 = vmul.bf16 %v433_v37, %v432_v36 }
 0x62a   :  { %v439_v40 = vmul.bf16 %v438_v35, %v434_v38 }
 0x62c   :  { %v448_v41 = vadd.bf16 %v447_v39, %v439_v40 }
 0x62e   :  { %v449_v43 = vmax.bf16 %v728_v42, %v448_v41 }
 0x630   :  { %v450_v45 = vunpack.c.l.bf16 %v449_v43 }
 0x632   :  { %451 = vst [vmem:[#allocation11] sm:$0xff] %v450_v45 }
 0x633   :  { %700 = shalt.err (!%p697_p1)
}
 0x634   :  { %461 = dma.vmem_to_hbm [thread:$0]  %s459_s4, 128, %s843_s5, [#allocation4]  }
 0x635   :  { %715 = dma.done.wait [#allocation4], 128  }
 0x636   :  { %716 = vsyncadd [#allocation4], 4294967168 }
 0x637   :  { %465 = vsyncpa [#allocation3], 1 }
 0x638   :  { %466 = vsyncpa [#allocation6], 1 }
 0x639   :  { %467 = vsyncpa [#allocation9], 1 }
 0x63a   :  { %468 = vsyncpa [#allocation4], 1 }

</bundles_post_ra>
